<compile_context>
chip_gen: v6e
topology: v6e:2x2x1
jax: 0.10.0
libtpu: 0.0.40
codegen_flags: <defaults>
</compile_context>

<pallas_src>
import functools

import jax
import jax.numpy as jnp
from jax.experimental import pallas as pl
from jax.experimental.pallas import tpu as pltpu

EPS = 1e-5  # InstanceNorm2d default eps


def _mixing_kernel(x_ref, y_ref, w_ref, a_ref, o_ref, *, H, W):
    # x_ref, y_ref : (Cb, L) flattened spatial slabs, L = H*W
    # w_ref        : (Cb, 19) f32 -- [:, 0:9] taps for x-channel, [:, 9:18]
    #                 taps for y-channel, [:, 18] conv bias
    # a_ref        : (1,) SMEM PReLU alpha (single shared parameter)
    # o_ref        : (Cb, L)
    Cb, L = o_ref.shape
    x = x_ref[...].astype(jnp.float32)
    y = y_ref[...].astype(jnp.float32)
    wt = w_ref[...]

    # Flattened-lane position -> image row/col, for 3x3 halo edge masks.
    pos = jax.lax.broadcasted_iota(jnp.int32, (Cb, L), 1)
    col = pos % W
    col_ok = {-1: col >= 1, 1: col <= W - 2}          # j + dx in [0, W)
    row_ok = {-1: pos >= W, 1: pos < (H - 1) * W}     # i + dy in [0, H)

    def lane_shift(a, off):
        # t[:, p] = a[:, p + off] (wraps; wrapped entries are masked later).
        if off == 0:
            return a
        return pltpu.roll(a, shift=(-off) % L, axis=1)

    # 3 dx-shifted, column-masked views per input, built once and reused for
    # every dy tap.
    def dx_views(a):
        return {dx: a if dx == 0
                else jnp.where(col_ok[dx], lane_shift(a, dx), 0.0)
                for dx in (-1, 0, 1)}

    sx = dx_views(x)
    sy = dx_views(y)

    acc = jnp.zeros((Cb, L), jnp.float32) + wt[:, 18:19]   # conv bias
    for dy in (-1, 0, 1):
        inner = jnp.zeros((Cb, L), jnp.float32)
        for dx in (-1, 0, 1):
            k = (dy + 1) * 3 + (dx + 1)
            inner = inner \
                + wt[:, k:k + 1] * lane_shift(sx[dx], dy * W) \
                + wt[:, 9 + k:10 + k] * lane_shift(sy[dx], dy * W)
        if dy != 0:
            inner = jnp.where(row_ok[dy], inner, 0.0)
        acc = acc + inner

    # PReLU with a single shared alpha (PyTorch PReLU() default).
    alpha = a_ref[0]
    acc = jnp.where(acc >= 0, acc, alpha * acc)

    # InstanceNorm2d (affine=False): per-(b, c) stats over the spatial lanes,
    # single pass, biased variance.
    inv_n = jnp.float32(1.0 / L)
    mean = jnp.sum(acc, axis=1, keepdims=True) * inv_n
    ex2 = jnp.sum(acc * acc, axis=1, keepdims=True) * inv_n
    var = jnp.maximum(ex2 - mean * mean, 0.0)
    o_ref[...] = ((acc - mean) * jax.lax.rsqrt(var + EPS)).astype(o_ref.dtype)


def _pick_channel_block(C, L):
    """Largest channel block (multiple of 8, or full C) whose per-step f32
    working set (double-buffered I/O + in-kernel temporaries) stays a few MiB
    -- large DMA transfers without pressuring v7x's smaller VMEM."""
    budget_bytes = 4 << 20
    per_channel = 16 * L * 4      # ~ (3 IO x 2 bufs + ~10 temps) * L * 4B
    cb = max(1, budget_bytes // per_channel)
    if cb >= C:
        return C
    cb = (cb // 8) * 8
    while cb >= 8:
        if C % cb == 0:
            return cb
        cb -= 8
    return 8 if C % 8 == 0 else C


def mixing_block(x, y, weight, bias, alpha):
    """x, y: (B, C, H, W); weight: (C, 2, 3, 3); bias: (C,); alpha: (1,)."""
    B, C, H, W = x.shape
    L = H * W

    # Flatten spatial dims (contiguous reshape; no padded HBM copy).
    x2 = x.reshape(B, C, L)
    y2 = y.reshape(B, C, L)

    # Conv weights + bias as one small lane-minor array: (C, 19).
    w_all = jnp.concatenate(
        [weight[:, 0].reshape(C, 9),      # taps applied to x-channel c
         weight[:, 1].reshape(C, 9),      # taps applied to y-channel c
         bias.reshape(C, 1)], axis=1).astype(jnp.float32)
    alpha = jnp.asarray(alpha, jnp.float32).reshape(1)

    Cb = _pick_channel_block(C, L)
    grid = (B, C // Cb)

    out = pl.pallas_call(
        functools.partial(_mixing_kernel, H=H, W=W),
        out_shape=jax.ShapeDtypeStruct((B, C, L), x.dtype),
        grid=grid,
        in_specs=[
            pl.BlockSpec((None, Cb, L), lambda b, c: (b, c, 0)),
            pl.BlockSpec((None, Cb, L), lambda b, c: (b, c, 0)),
            pl.BlockSpec((Cb, 19), lambda b, c: (c, 0)),
            pl.BlockSpec(memory_space=pltpu.MemorySpace.SMEM),
        ],
        out_specs=pl.BlockSpec((None, Cb, L), lambda b, c: (b, c, 0)),
        compiler_params=pltpu.CompilerParams(
            dimension_semantics=("parallel", "parallel"),
            vmem_limit_bytes=32 * 1024 * 1024),
    )(x2, y2, w_all, alpha)
    return out.reshape(B, C, H, W)


def mixing_block_ref(x, y, weight, bias, alpha):
    """Pure-JAX reference matching the PyTorch forward exactly."""
    B, C, H, W = x.shape
    mixed = jnp.stack((x, y), axis=2).reshape(B, 2 * C, H, W)
    out = jax.lax.conv_general_dilated(
        mixed, weight, window_strides=(1, 1), padding=((1, 1), (1, 1)),
        dimension_numbers=("NCHW", "OIHW", "NCHW"), feature_group_count=C)
    out = out + bias[None, :, None, None]
    out = jnp.where(out >= 0, out, alpha[0] * out)           # PReLU
    mean = out.mean(axis=(2, 3), keepdims=True)
    var = ((out - mean) ** 2).mean(axis=(2, 3), keepdims=True)
    return (out - mean) / jnp.sqrt(var + EPS)                 # InstanceNorm2d


if __name__ == "__main__":
    key = jax.random.PRNGKey(0)
    kx, ky, kw, kb = jax.random.split(key, 4)

    # ch_in = 2*C, ch_out = C  (MixingBlock(ch_in=8, ch_out=4))
    B, C, H, W = 2, 4, 16, 16
    x = jax.random.normal(kx, (B, C, H, W), jnp.float32)
    y = jax.random.normal(ky, (B, C, H, W), jnp.float32)
    weight = jax.random.normal(kw, (C, 2, 3, 3), jnp.float32) * 0.1
    bias = jax.random.normal(kb, (C,), jnp.float32) * 0.1
    alpha = jnp.array([0.25], jnp.float32)  # PReLU default init

    out = mixing_block(x, y, weight, bias, alpha)
    out = jax.block_until_ready(out)

    ref = mixing_block_ref(x, y, weight, bias, alpha)
    assert out.shape == (B, C, H, W)
    assert jnp.max(jnp.abs(out - ref)) < 1e-4

    print("KERNEL_OK")
</pallas_src>

<mosaic_0001>
module attributes {stable_mosaic.version = 11 : i64} {
  func.func @_mixing_kernel(%arg0: i32, %arg1: i32, %arg2: memref<1x4x256xf32, #tpu.memory_space<vmem>>, %arg3: memref<1x4x256xf32, #tpu.memory_space<vmem>>, %arg4: memref<4x19xf32, #tpu.memory_space<vmem>>, %arg5: memref<1xf32, #tpu.memory_space<smem>>, %arg6: memref<1x4x256xf32, #tpu.memory_space<vmem>>) attributes {dimension_semantics = [#tpu.dimension_semantics<parallel>, #tpu.dimension_semantics<parallel>], iteration_bounds = array<i64: 2, 1>, scalar_prefetch = 0 : i64, scratch_operands = 0 : i64, tpu.core_type = #tpu.core_type<tc>, window_params = [{transform_indices = @transform_0, window_bounds = array<i64: 1, 4, 256>}, {transform_indices = @transform_1, window_bounds = array<i64: 1, 4, 256>}, {transform_indices = @transform_2, window_bounds = array<i64: 4, 19>}, {transform_indices = @transform_3, window_bounds = array<i64: 1>}, {transform_indices = @transform_4, window_bounds = array<i64: 1, 4, 256>}]} {
    %c0 = arith.constant 0 : index
    %c0_0 = arith.constant 0 : index
    %c0_1 = arith.constant 0 : index
    %0 = vector.load %arg2[%c0, %c0_0, %c0_1] : memref<1x4x256xf32, #tpu.memory_space<vmem>>, vector<1x4x256xf32>
    %1 = vector.shape_cast %0 : vector<1x4x256xf32> to vector<4x256xf32>
    %c0_2 = arith.constant 0 : index
    %c0_3 = arith.constant 0 : index
    %c0_4 = arith.constant 0 : index
    %2 = vector.load %arg3[%c0_2, %c0_3, %c0_4] : memref<1x4x256xf32, #tpu.memory_space<vmem>>, vector<1x4x256xf32>
    %3 = vector.shape_cast %2 : vector<1x4x256xf32> to vector<4x256xf32>
    %c0_5 = arith.constant 0 : index
    %c0_6 = arith.constant 0 : index
    %4 = vector.load %arg4[%c0_5, %c0_6] : memref<4x19xf32, #tpu.memory_space<vmem>>, vector<4x19xf32>
    %5 = tpu.iota {dimensions = array<i32: 1>} : vector<4x256xi32>
    %c16_i32 = arith.constant 16 : i32
    %c0_i32 = arith.constant 0 : i32
    %6 = arith.cmpi eq, %c16_i32, %c0_i32 : i32
    %c1_i32 = arith.constant 1 : i32
    %7 = arith.select %6, %c1_i32, %c16_i32 : i32
    %8 = vector.broadcast %7 : i32 to vector<4x256xi32>
    %9 = arith.remsi %5, %8 : vector<4x256xi32>
    %c0_i32_7 = arith.constant 0 : i32
    %10 = vector.broadcast %c0_i32_7 : i32 to vector<4x256xi32>
    %11 = arith.cmpi ne, %9, %10 : vector<4x256xi32>
    %c0_i32_8 = arith.constant 0 : i32
    %12 = vector.broadcast %c0_i32_8 : i32 to vector<4x256xi32>
    %13 = arith.cmpi slt, %9, %12 : vector<4x256xi32>
    %c0_i32_9 = arith.constant 0 : i32
    %14 = arith.cmpi slt, %7, %c0_i32_9 : i32
    %15 = vector.broadcast %14 : i1 to vector<4x256xi1>
    %16 = vector.broadcast %15 : vector<4x256xi1> to vector<4x256xi1>
    %17 = arith.xori %13, %16 : vector<4x256xi1>
    %18 = arith.andi %17, %11 : vector<4x256xi1>
    %19 = vector.broadcast %7 : i32 to vector<4x256xi32>
    %20 = arith.addi %9, %19 : vector<4x256xi32>
    %21 = arith.select %18, %20, %9 : vector<4x256xi1>, vector<4x256xi32>
    %c1_i32_10 = arith.constant 1 : i32
    %22 = vector.broadcast %c1_i32_10 : i32 to vector<4x256xi32>
    %23 = arith.cmpi sge, %21, %22 : vector<4x256xi32>
    %c14_i32 = arith.constant 14 : i32
    %24 = vector.broadcast %c14_i32 : i32 to vector<4x256xi32>
    %25 = arith.cmpi sle, %21, %24 : vector<4x256xi32>
    %c16_i32_11 = arith.constant 16 : i32
    %26 = vector.broadcast %c16_i32_11 : i32 to vector<4x256xi32>
    %27 = arith.cmpi sge, %5, %26 : vector<4x256xi32>
    %c240_i32 = arith.constant 240 : i32
    %28 = vector.broadcast %c240_i32 : i32 to vector<4x256xi32>
    %29 = arith.cmpi slt, %5, %28 : vector<4x256xi32>
    %c1_i32_12 = arith.constant 1 : i32
    %30 = tpu.dynamic_rotate %1 by %c1_i32_12 dim 1 : vector<4x256xf32>, i32 -> vector<4x256xf32>
    %cst = arith.constant 0.000000e+00 : f32
    %31 = vector.broadcast %cst : f32 to vector<4x256xf32>
    %32 = arith.select %23, %30, %31 : vector<4x256xi1>, vector<4x256xf32>
    %c255_i32 = arith.constant 255 : i32
    %33 = tpu.dynamic_rotate %1 by %c255_i32 dim 1 : vector<4x256xf32>, i32 -> vector<4x256xf32>
    %cst_13 = arith.constant 0.000000e+00 : f32
    %34 = vector.broadcast %cst_13 : f32 to vector<4x256xf32>
    %35 = arith.select %25, %33, %34 : vector<4x256xi1>, vector<4x256xf32>
    %c1_i32_14 = arith.constant 1 : i32
    %36 = tpu.dynamic_rotate %3 by %c1_i32_14 dim 1 : vector<4x256xf32>, i32 -> vector<4x256xf32>
    %cst_15 = arith.constant 0.000000e+00 : f32
    %37 = vector.broadcast %cst_15 : f32 to vector<4x256xf32>
    %38 = arith.select %23, %36, %37 : vector<4x256xi1>, vector<4x256xf32>
    %c255_i32_16 = arith.constant 255 : i32
    %39 = tpu.dynamic_rotate %3 by %c255_i32_16 dim 1 : vector<4x256xf32>, i32 -> vector<4x256xf32>
    %cst_17 = arith.constant 0.000000e+00 : f32
    %40 = vector.broadcast %cst_17 : f32 to vector<4x256xf32>
    %41 = arith.select %25, %39, %40 : vector<4x256xi1>, vector<4x256xf32>
    %cst_18 = arith.constant 0.000000e+00 : f32
    %42 = vector.broadcast %cst_18 : f32 to vector<4x256xf32>
    %43 = vector.extract_strided_slice %4 {offsets = [0, 18], sizes = [4, 1], strides = [1, 1]} : vector<4x19xf32> to vector<4x1xf32>
    %44 = vector.broadcast %43 : vector<4x1xf32> to vector<4x256xf32>
    %45 = arith.addf %42, %44 : vector<4x256xf32>
    %cst_19 = arith.constant 0.000000e+00 : f32
    %46 = vector.broadcast %cst_19 : f32 to vector<4x256xf32>
    %47 = vector.extract_strided_slice %4 {offsets = [0, 0], sizes = [4, 1], strides = [1, 1]} : vector<4x19xf32> to vector<4x1xf32>
    %c16_i32_20 = arith.constant 16 : i32
    %48 = tpu.dynamic_rotate %32 by %c16_i32_20 dim 1 : vector<4x256xf32>, i32 -> vector<4x256xf32>
    %49 = vector.broadcast %47 : vector<4x1xf32> to vector<4x256xf32>
    %50 = arith.mulf %49, %48 : vector<4x256xf32>
    %51 = arith.addf %46, %50 : vector<4x256xf32>
    %52 = vector.extract_strided_slice %4 {offsets = [0, 9], sizes = [4, 1], strides = [1, 1]} : vector<4x19xf32> to vector<4x1xf32>
    %c16_i32_21 = arith.constant 16 : i32
    %53 = tpu.dynamic_rotate %38 by %c16_i32_21 dim 1 : vector<4x256xf32>, i32 -> vector<4x256xf32>
    %54 = vector.broadcast %52 : vector<4x1xf32> to vector<4x256xf32>
    %55 = arith.mulf %54, %53 : vector<4x256xf32>
    %56 = arith.addf %51, %55 : vector<4x256xf32>
    %57 = vector.extract_strided_slice %4 {offsets = [0, 1], sizes = [4, 1], strides = [1, 1]} : vector<4x19xf32> to vector<4x1xf32>
    %c16_i32_22 = arith.constant 16 : i32
    %58 = tpu.dynamic_rotate %1 by %c16_i32_22 dim 1 : vector<4x256xf32>, i32 -> vector<4x256xf32>
    %59 = vector.broadcast %57 : vector<4x1xf32> to vector<4x256xf32>
    %60 = arith.mulf %59, %58 : vector<4x256xf32>
    %61 = arith.addf %56, %60 : vector<4x256xf32>
    %62 = vector.extract_strided_slice %4 {offsets = [0, 10], sizes = [4, 1], strides = [1, 1]} : vector<4x19xf32> to vector<4x1xf32>
    %c16_i32_23 = arith.constant 16 : i32
    %63 = tpu.dynamic_rotate %3 by %c16_i32_23 dim 1 : vector<4x256xf32>, i32 -> vector<4x256xf32>
    %64 = vector.broadcast %62 : vector<4x1xf32> to vector<4x256xf32>
    %65 = arith.mulf %64, %63 : vector<4x256xf32>
    %66 = arith.addf %61, %65 : vector<4x256xf32>
    %67 = vector.extract_strided_slice %4 {offsets = [0, 2], sizes = [4, 1], strides = [1, 1]} : vector<4x19xf32> to vector<4x1xf32>
    %c16_i32_24 = arith.constant 16 : i32
    %68 = tpu.dynamic_rotate %35 by %c16_i32_24 dim 1 : vector<4x256xf32>, i32 -> vector<4x256xf32>
    %69 = vector.broadcast %67 : vector<4x1xf32> to vector<4x256xf32>
    %70 = arith.mulf %69, %68 : vector<4x256xf32>
    %71 = arith.addf %66, %70 : vector<4x256xf32>
    %72 = vector.extract_strided_slice %4 {offsets = [0, 11], sizes = [4, 1], strides = [1, 1]} : vector<4x19xf32> to vector<4x1xf32>
    %c16_i32_25 = arith.constant 16 : i32
    %73 = tpu.dynamic_rotate %41 by %c16_i32_25 dim 1 : vector<4x256xf32>, i32 -> vector<4x256xf32>
    %74 = vector.broadcast %72 : vector<4x1xf32> to vector<4x256xf32>
    %75 = arith.mulf %74, %73 : vector<4x256xf32>
    %76 = arith.addf %71, %75 : vector<4x256xf32>
    %cst_26 = arith.constant 0.000000e+00 : f32
    %77 = vector.broadcast %cst_26 : f32 to vector<4x256xf32>
    %78 = arith.select %27, %76, %77 : vector<4x256xi1>, vector<4x256xf32>
    %79 = arith.addf %45, %78 : vector<4x256xf32>
    %cst_27 = arith.constant 0.000000e+00 : f32
    %80 = vector.broadcast %cst_27 : f32 to vector<4x256xf32>
    %81 = vector.extract_strided_slice %4 {offsets = [0, 3], sizes = [4, 1], strides = [1, 1]} : vector<4x19xf32> to vector<4x1xf32>
    %82 = vector.broadcast %81 : vector<4x1xf32> to vector<4x256xf32>
    %83 = arith.mulf %82, %32 : vector<4x256xf32>
    %84 = arith.addf %80, %83 : vector<4x256xf32>
    %85 = vector.extract_strided_slice %4 {offsets = [0, 12], sizes = [4, 1], strides = [1, 1]} : vector<4x19xf32> to vector<4x1xf32>
    %86 = vector.broadcast %85 : vector<4x1xf32> to vector<4x256xf32>
    %87 = arith.mulf %86, %38 : vector<4x256xf32>
    %88 = arith.addf %84, %87 : vector<4x256xf32>
    %89 = vector.extract_strided_slice %4 {offsets = [0, 4], sizes = [4, 1], strides = [1, 1]} : vector<4x19xf32> to vector<4x1xf32>
    %90 = vector.broadcast %89 : vector<4x1xf32> to vector<4x256xf32>
    %91 = arith.mulf %90, %1 : vector<4x256xf32>
    %92 = arith.addf %88, %91 : vector<4x256xf32>
    %93 = vector.extract_strided_slice %4 {offsets = [0, 13], sizes = [4, 1], strides = [1, 1]} : vector<4x19xf32> to vector<4x1xf32>
    %94 = vector.broadcast %93 : vector<4x1xf32> to vector<4x256xf32>
    %95 = arith.mulf %94, %3 : vector<4x256xf32>
    %96 = arith.addf %92, %95 : vector<4x256xf32>
    %97 = vector.extract_strided_slice %4 {offsets = [0, 5], sizes = [4, 1], strides = [1, 1]} : vector<4x19xf32> to vector<4x1xf32>
    %98 = vector.broadcast %97 : vector<4x1xf32> to vector<4x256xf32>
    %99 = arith.mulf %98, %35 : vector<4x256xf32>
    %100 = arith.addf %96, %99 : vector<4x256xf32>
    %101 = vector.extract_strided_slice %4 {offsets = [0, 14], sizes = [4, 1], strides = [1, 1]} : vector<4x19xf32> to vector<4x1xf32>
    %102 = vector.broadcast %101 : vector<4x1xf32> to vector<4x256xf32>
    %103 = arith.mulf %102, %41 : vector<4x256xf32>
    %104 = arith.addf %100, %103 : vector<4x256xf32>
    %105 = arith.addf %79, %104 : vector<4x256xf32>
    %cst_28 = arith.constant 0.000000e+00 : f32
    %106 = vector.broadcast %cst_28 : f32 to vector<4x256xf32>
    %107 = vector.extract_strided_slice %4 {offsets = [0, 6], sizes = [4, 1], strides = [1, 1]} : vector<4x19xf32> to vector<4x1xf32>
    %c240_i32_29 = arith.constant 240 : i32
    %108 = tpu.dynamic_rotate %32 by %c240_i32_29 dim 1 : vector<4x256xf32>, i32 -> vector<4x256xf32>
    %109 = vector.broadcast %107 : vector<4x1xf32> to vector<4x256xf32>
    %110 = arith.mulf %109, %108 : vector<4x256xf32>
    %111 = arith.addf %106, %110 : vector<4x256xf32>
    %112 = vector.extract_strided_slice %4 {offsets = [0, 15], sizes = [4, 1], strides = [1, 1]} : vector<4x19xf32> to vector<4x1xf32>
    %c240_i32_30 = arith.constant 240 : i32
    %113 = tpu.dynamic_rotate %38 by %c240_i32_30 dim 1 : vector<4x256xf32>, i32 -> vector<4x256xf32>
    %114 = vector.broadcast %112 : vector<4x1xf32> to vector<4x256xf32>
    %115 = arith.mulf %114, %113 : vector<4x256xf32>
    %116 = arith.addf %111, %115 : vector<4x256xf32>
    %117 = vector.extract_strided_slice %4 {offsets = [0, 7], sizes = [4, 1], strides = [1, 1]} : vector<4x19xf32> to vector<4x1xf32>
    %c240_i32_31 = arith.constant 240 : i32
    %118 = tpu.dynamic_rotate %1 by %c240_i32_31 dim 1 : vector<4x256xf32>, i32 -> vector<4x256xf32>
    %119 = vector.broadcast %117 : vector<4x1xf32> to vector<4x256xf32>
    %120 = arith.mulf %119, %118 : vector<4x256xf32>
    %121 = arith.addf %116, %120 : vector<4x256xf32>
    %122 = vector.extract_strided_slice %4 {offsets = [0, 16], sizes = [4, 1], strides = [1, 1]} : vector<4x19xf32> to vector<4x1xf32>
    %c240_i32_32 = arith.constant 240 : i32
    %123 = tpu.dynamic_rotate %3 by %c240_i32_32 dim 1 : vector<4x256xf32>, i32 -> vector<4x256xf32>
    %124 = vector.broadcast %122 : vector<4x1xf32> to vector<4x256xf32>
    %125 = arith.mulf %124, %123 : vector<4x256xf32>
    %126 = arith.addf %121, %125 : vector<4x256xf32>
    %127 = vector.extract_strided_slice %4 {offsets = [0, 8], sizes = [4, 1], strides = [1, 1]} : vector<4x19xf32> to vector<4x1xf32>
    %c240_i32_33 = arith.constant 240 : i32
    %128 = tpu.dynamic_rotate %35 by %c240_i32_33 dim 1 : vector<4x256xf32>, i32 -> vector<4x256xf32>
    %129 = vector.broadcast %127 : vector<4x1xf32> to vector<4x256xf32>
    %130 = arith.mulf %129, %128 : vector<4x256xf32>
    %131 = arith.addf %126, %130 : vector<4x256xf32>
    %132 = vector.extract_strided_slice %4 {offsets = [0, 17], sizes = [4, 1], strides = [1, 1]} : vector<4x19xf32> to vector<4x1xf32>
    %c240_i32_34 = arith.constant 240 : i32
    %133 = tpu.dynamic_rotate %41 by %c240_i32_34 dim 1 : vector<4x256xf32>, i32 -> vector<4x256xf32>
    %134 = vector.broadcast %132 : vector<4x1xf32> to vector<4x256xf32>
    %135 = arith.mulf %134, %133 : vector<4x256xf32>
    %136 = arith.addf %131, %135 : vector<4x256xf32>
    %cst_35 = arith.constant 0.000000e+00 : f32
    %137 = vector.broadcast %cst_35 : f32 to vector<4x256xf32>
    %138 = arith.select %29, %136, %137 : vector<4x256xi1>, vector<4x256xf32>
    %139 = arith.addf %105, %138 : vector<4x256xf32>
    %c0_36 = arith.constant 0 : index
    %140 = memref.load %arg5[%c0_36] : memref<1xf32, #tpu.memory_space<smem>>
    %cst_37 = arith.constant 0.000000e+00 : f32
    %141 = vector.broadcast %cst_37 : f32 to vector<4x256xf32>
    %142 = arith.cmpf oge, %139, %141 : vector<4x256xf32>
    %143 = vector.broadcast %140 : f32 to vector<4x256xf32>
    %144 = arith.mulf %143, %139 : vector<4x256xf32>
    %145 = arith.select %142, %139, %144 : vector<4x256xi1>, vector<4x256xf32>
    %cst_38 = arith.constant dense<0.000000e+00> : vector<4xf32>
    %146 = vector.multi_reduction <add>, %145, %cst_38 [1] : vector<4x256xf32> to vector<4xf32>
    %147 = vector.shape_cast %146 : vector<4xf32> to vector<4x1xf32>
    %cst_39 = arith.constant 3.906250e-03 : f32
    %148 = vector.broadcast %cst_39 : f32 to vector<4x1xf32>
    %149 = arith.mulf %147, %148 : vector<4x1xf32>
    %150 = arith.mulf %145, %145 : vector<4x256xf32>
    %cst_40 = arith.constant dense<0.000000e+00> : vector<4xf32>
    %151 = vector.multi_reduction <add>, %150, %cst_40 [1] : vector<4x256xf32> to vector<4xf32>
    %152 = vector.shape_cast %151 : vector<4xf32> to vector<4x1xf32>
    %cst_41 = arith.constant 3.906250e-03 : f32
    %153 = vector.broadcast %cst_41 : f32 to vector<4x1xf32>
    %154 = arith.mulf %152, %153 : vector<4x1xf32>
    %155 = arith.mulf %149, %149 : vector<4x1xf32>
    %156 = arith.subf %154, %155 : vector<4x1xf32>
    %cst_42 = arith.constant 0.000000e+00 : f32
    %157 = vector.broadcast %cst_42 : f32 to vector<4x1xf32>
    %158 = arith.maximumf %156, %157 : vector<4x1xf32>
    %159 = vector.broadcast %149 : vector<4x1xf32> to vector<4x256xf32>
    %160 = arith.subf %145, %159 : vector<4x256xf32>
    %cst_43 = arith.constant 9.99999974E-6 : f32
    %161 = vector.broadcast %cst_43 : f32 to vector<4x1xf32>
    %162 = arith.addf %158, %161 : vector<4x1xf32>
    %163 = math.rsqrt %162 : vector<4x1xf32>
    %164 = vector.broadcast %163 : vector<4x1xf32> to vector<4x256xf32>
    %165 = arith.mulf %160, %164 : vector<4x256xf32>
    %c0_44 = arith.constant 0 : index
    %c0_45 = arith.constant 0 : index
    %c0_46 = arith.constant 0 : index
    %166 = vector.load %arg6[%c0_44, %c0_45, %c0_46] : memref<1x4x256xf32, #tpu.memory_space<vmem>>, vector<1x4x256xf32>
    %167 = vector.shape_cast %166 : vector<1x4x256xf32> to vector<4x256xf32>
    %168 = vector.shape_cast %165 : vector<4x256xf32> to vector<1x4x256xf32>
    tpu.vector_store %arg6[%c0_44, %c0_45, %c0_46], %168 {strides = array<i32>} : memref<1x4x256xf32, #tpu.memory_space<vmem>>, vector<1x4x256xf32>,
    return
  }
  func.func @transform_0(%arg0: i32, %arg1: i32) -> (i32, i32, i32) {
    %c0_i32 = arith.constant 0 : i32
    %c0_i32_0 = arith.constant 0 : i32
    return %arg0, %arg1, %c0_i32 : i32, i32, i32
  }
  func.func @transform_1(%arg0: i32, %arg1: i32) -> (i32, i32, i32) {
    %c0_i32 = arith.constant 0 : i32
    %c0_i32_0 = arith.constant 0 : i32
    return %arg0, %arg1, %c0_i32 : i32, i32, i32
  }
  func.func @transform_2(%arg0: i32, %arg1: i32) -> (i32, i32) {
    %c0_i32 = arith.constant 0 : i32
    %c0_i32_0 = arith.constant 0 : i32
    return %arg1, %c0_i32 : i32, i32
  }
  func.func @transform_3(%arg0: i32, %arg1: i32) -> i32 {
    %c0_i32 = arith.constant 0 : i32
    %c0_i32_0 = arith.constant 0 : i32
    return %c0_i32 : i32
  }
  func.func @transform_4(%arg0: i32, %arg1: i32) -> (i32, i32, i32) {
    %c0_i32 = arith.constant 0 : i32
    %c0_i32_0 = arith.constant 0 : i32
    return %arg0, %arg1, %c0_i32 : i32, i32, i32
  }
}

</mosaic_0001>

<bundles_post_ra>
// kernel: tpu_custom_call.1
= control target key start
LH: loop header
LB: loop body
LE: loop exit
PB: predicated region body
PF: predicated region fallthrough
CT: control target
= control target key end

     0   :  { %s1470_s0 = inlined_call_operand.hbm [shape: f32[2,4,256], index: 0, kind: input, shape index: {}]   ;;  %s1471_s1 = inlined_call_operand.hbm [shape: f32[2,4,256], index: 1, kind: input, shape index: {}]   ;;  %s1472_s2 = inlined_call_operand.vmem [shape: f32[4,19], index: 2, kind: input, shape index: {}]   ;;  %s1473_s3 = inlined_call_operand.<no memory space> [shape: f32[1], index: 3, kind: input, shape index: {}]   ;;  %s1474_s4 = inlined_call_operand.hbm [shape: f32[2,4,256], index: 4, kind: output, shape index: {}]  }
   0x1   :  { %9 = sst [smem:[#allocation2]] %s1473_s3 }
   0x2   :  { %10 = vsyncpa [#allocation4], 0 }
   0x3   :  { %12 = vsyncpa [#allocation4 + $0x1], 0 }
   0x4   :  { %13 = vsyncpa [#allocation7], 0 }
   0x5   :  { %15 = vsyncpa [#allocation7 + $0x1], 0 }
   0x6   :  { %16 = vsyncpa [#allocation5], 0 }
   0x7   :  { %18 = vsyncpa [#allocation5 + $0x1], 0  ;;  %s1115_s17 = smov 0   ;;  %s1117_s18 = smov 0  }
   0x8   :  { %s1119_s19 = smov 0   ;;  %s1121_s20 = smov 0  }
   0x9   :  { %s1123_s21 = smov 0   ;;  %s1125_s22 = smov 0  }
   0xa LB: > { %s783_s3 = sadd.s32 4294967295, %s1059_s22   ;;  %s784_s23 = sadd.s32 4294967294, %s1059_s22   ;;  %s1059_s22 = sphi %s1125_s22, %s24_s22   ;;  %s1055_s21 = sphi %s1123_s21, %s1486_s21   ;;  %s1051_s20 = sphi %s1121_s20, %s1485_s20   ;;  %s1047_s19 = sphi %s1119_s19, %s1484_s19   ;;  %s1043_s18 = sphi %s1117_s18, %s1483_s18   ;;  %s1039_s17 = sphi %s1115_s17, %s1482_s17  }
   0xb   : > { %s36_s24 = sadd.s32 1, %s1055_s21  ;;  %s45_s25 = sadd.s32 1, %s1047_s19 }
   0xc   : > { %p38_p0 = scmp.ge.s32.totalorder %s36_s24, 2  ;;  %p52_p1 = scmp.ne.s32.totalorder %s1047_s19, %s1043_s18 }
   0xd   : > { %p53_p2 = scmp.eq.s32.totalorder %s1059_s22, 0  ;;  %p58_p3 = scmp.ne.s32.totalorder %s1043_s18, %s1039_s17 }
   0xe   : > { %s1488_s24 = smov (%p38_p0, %s36_s24), 0  ;;  %p59_p5 = scmp.eq.s32.totalorder %s783_s3, 0 }
   0xf   : > { %p1156_p4 = por %p53_p2, %p52_p1  ;;  %s40_s27 = ssub.s32 %s1055_s21, %s1488_s24 }
  0x10   : > { %p159_p6 = scmp.eq.s32.totalorder %s783_s3, 1  ;;  %p43_p7 = scmp.eq.s32.totalorder %s40_s27, 0 }
  0x11   : > { %p1162_p8 = por %p59_p5, %p58_p3  ;;  %p165_p10 = scmp.eq.s32.totalorder %s784_s23, 1 }
  0x12   : > { %p1166_p9 = por %p159_p6, %p52_p1  ;;  %p823_p13 = scmp.lt.s32.totalorder %s1059_s22, 2 }
  0x13   : > { %s1171_s30 = scalar_select %p43_p7, %s1047_s19, %s45_s25  }
  0x14   : > { %p1173_p11 = por %p165_p10, %p58_p3  ;;  %s1180_s6 = sand.u32 1, %s1047_s19  }
  0x15   : > { %s788_s7 = sshll.u32 %s1180_s6, 3  ;;  %s803_s8 = sshll.u32 %s1055_s21, 7 }
  0x16   : > { %s207_s11 = scalar_lea.hbm %s1470_s0, %s803_s8  ;;  %s199_s12 = scalar_lea.vmem [#allocation3], %s788_s7 }
  0x17   : > { %s209_s13 = sshll.u32 %s199_s12, 4  ;;  %p1189_p0 = pnand %p823_p13, %p1156_p4  ;;  %s210_s13 = int_to_ptr.vmem [resolvable:$true] %s209_s13 }
  0x18   : > { %p794_p1 = scmp.ge.s32.totalorder %s1059_s22, 1  ;;  %p235_p2 = scmp.lt.s32.totalorder %s1059_s22, 3 }
  0x19   : > { %s196_s15 = scalar_lea.sflag [#allocation4], %s1180_s6  ;;  %p921_p3 = pneg %p1189_p0 }
  0x1a   : > { %s932_s16 = scalar_lea.vmem %s210_s13, 128  ;;  %s1061_s3 = smov [#allocation3]  }
  0x1b   : > { %p933_p5 = scmp.ne.s32.totalorder %s210_s13, %s932_s16  ;;  %s937_s23 = sshll.u32 %s1061_s3, 4  ;;  %s938_s23 = int_to_ptr.vmem [resolvable:$false] %s937_s23 }
  0x1c   : > { %s939_s25 = scalar_lea.vmem %s938_s23, 256  ;;  %p940_p4 = scmp.lt.s32.totalorder %s210_s13, %s938_s23 }
  0x1d   : > { %p935_p6 = pnand %p933_p5, %p921_p3  ;;  %p941_p10 = scmp.lt.s32.totalorder %s939_s25, %s932_s16 }
  0x1f   : > { %p936_p7 = pneg %p935_p6  ;;  %p942_p13 = por %p941_p10, %p940_p4 }
  0x21   : > { %p943_p12 = pnand %p942_p13, %p936_p7 }
  0x23   : > { %946 = shalt.err (!%p943_p12)
}
  0x24   : > { %815 = dma.hbm_to_vmem [thread:$0]  (!%p1189_p0), %s207_s11, 128, %s210_s13, %s196_s15  }
  0x25   : > { %p1207_p5 = pnand %p794_p1, %p235_p2  ;;  %s228_s10 = scalar_lea.hbm %s1471_s1, %s803_s8 }
  0x26   : > { %s220_s12 = scalar_lea.vmem [#allocation6], %s788_s7  ;;  %s217_s3 = scalar_lea.sflag [#allocation7], %s1180_s6 }
  0x27   : > { %s230_s16 = sshll.u32 %s220_s12, 4  ;;  %s1062_s11 = smov [#allocation6]   ;;  %s231_s16 = int_to_ptr.vmem [resolvable:$true] %s230_s16 }
  0x28   : > { %s960_s23 = scalar_lea.vmem %s231_s16, 128  ;;  %s965_s13 = sshll.u32 %s1062_s11, 4  ;;  %s966_s13 = int_to_ptr.vmem [resolvable:$false] %s965_s13 }
  0x29   : > { %p961_p12 = scmp.ne.s32.totalorder %s231_s16, %s960_s23  ;;  %s967_s15 = scalar_lea.vmem %s966_s13, 256 }
  0x2a   : > { %p968_p1 = scmp.lt.s32.totalorder %s231_s16, %s966_s13  ;;  %p969_p2 = scmp.lt.s32.totalorder %s967_s15, %s960_s23 }
  0x2b   : > { %p963_p6 = pnand %p961_p12, %p921_p3 }
  0x2c   : > { %p970_p4 = por %p969_p2, %p968_p1 }
  0x2d   : > { %p964_p7 = pneg %p963_p6 }
  0x2f   : > { %p971_p10 = pnand %p970_p4, %p964_p7 }
  0x31   : > { %974 = shalt.err (!%p971_p10)
}
  0x32   : > { %818 = dma.hbm_to_vmem [thread:$0]  (!%p1189_p0), %s228_s10, 128, %s231_s16, %s217_s3  }
  0x33   : > { %239 = sbr.rel (%p1207_p5) target bundleno = 530 (0x212), region = 36  ;;  %s1223_s6 = sand.u32 (!%p1207_p5), 1, %s1043_s18  }
  0x34   : > { %s1226_s7 = sshll.u32 (!%p1207_p5), %s1223_s6, 3  ;;  %s242_s8 = scalar_lea.sflag (!%p1207_p5), [#allocation4], %s1223_s6 }
  0x35   : > { %s245_s25 = scalar_lea.vmem (!%p1207_p5), [#allocation3], %s1226_s7 }
  0x38   : > { %1026 = dma.done.wait (%p1162_p8), %s242_s8, 128  }
  0x39   : > { %1028 = vsyncadd (%p1162_p8), %s242_s8, 4294967168  ;;  %s251_s14 = scalar_lea.sflag [#allocation7], %s1223_s6  ;;  %s254_s26 = scalar_lea.vmem [#allocation6], %s1226_s7 }
  0x3a   : > { %1030 = dma.done.wait (%p1162_p8), %s251_s14, 128  }
  0x3b   : > { %1032 = vsyncadd (%p1162_p8), %s251_s14, 4294967168  ;;  %v1063_v0 = vmov 9   ;;  %v1064_v1 = vmov 0   ;;  %v1240_v2 = vld [vmem:[%s254_s26] sm:$0xff]  ;;  %v1242_v3 = vld [vmem:[%s245_s25] sm:$0xff]  ;;  %s1065_s27 = smov 1   ;;  %v295_v24 = vlaneseq }
  0x3c   : > { %897 = vset.pattern.permute.xlu1 %v1063_v0  ;;  %896 = vset.pattern.permute.xlu0 %v1064_v1  ;;  %v1248_v4 = vcombine.high %v1240_v2, %v1240_v2  ;;  %s1066_s28 = smov 127   ;;  %v1254_v5 = vcombine.high %v1242_v3, %v1242_v3  ;;  %v294_v6 = vld [vmem:[%s1472_s2] sm:$0xf]  ;;  %v1067_v7 = vmov 1   ;;  %v1068_v8 = vmov 3   ;;  %s1072_s12 = smov 16  }
  0x3d   : > { %354 = vrot.lane.b32.xlu1 %v1240_v2, %s1065_s27  ;;  %333 = vrot.lane.b32.xlu0 %v1242_v3, %s1065_s27  ;;  %v1069_v9 = vmov 12   ;;  %v1070_v10 = vmov 6   ;;  %v1071_v11 = vmov 10   ;;  %v1073_v12 = vmov 2   ;;  %s1079_s16 = smov 112   ;;  %s1407_s3 = sld [smem:[#allocation2]] }
  0x3e   : > { %v1074_v13 = vmov 15   ;;  %v1075_v14 = vmov 11   ;;  %v1076_v15 = vmov 4   ;;  %v1077_v16 = vmov 16   ;;  %s805_s23 = sshll.u32 %s1051_s20, 7  ;;  %s287_s11 = scalar_lea.vmem [#allocation8], %s1226_s7 }
  0x3f   : > { %v1078_v17 = vmov 7   ;;  %v1080_v18 = vmov 14   ;;  %v1081_v19 = vmov 13   ;;  %v1082_v20 = vmov 5   ;;  %s658_s13 = sshll.u32 %s287_s11, 4  ;;  %s656_s25 = scalar_lea.hbm %s1474_s4, %s805_s23  ;;  %s659_s13 = int_to_ptr.vmem [resolvable:$true] %s658_s13 }
  0x40   : > { %v1083_v21 = vmov 17   ;;  %v1084_v22 = vmov 8   ;;  %v1085_v23 = vmov 18   ;;  %v1279_v25 = vand.u32 127, %v295_v24  ;;  %s642_s14 = scalar_lea.sflag [#allocation5], %s1223_s6  ;;  %s975_s26 = scalar_lea.vmem %s659_s13, 128 }
  0x41   : > { %356 = vrot.lane.b32.xlu1 %v1248_v4, %s1065_s27  ;;  %342 = vrot.lane.b32.xlu0 %v1242_v3, %s1066_s28  ;;  %vm612_vm11 = vcmask 1043456   ;;  %p976_p8 = scmp.ne.s32.totalorder %s659_s13, %s975_s26 }
  0x42   : > { %v1282_v26 = vadd.s32 128, %v1279_v25  ;;  %v302_v29 = vand.u32 15, %v1279_v25  ;;  %vm337_vm0 = vcmp.lt.s32.totalorder %v1279_v25, 1  ;;  %vm346_vm3 = vcmp.lt.s32.totalorder %v1279_v25, 127 }
  0x43   : > { %vm380_vm6 = vcmp.lt.s32.totalorder %v1279_v25, 16  ;;  %vm519_vm7 = vcmp.lt.s32.totalorder %v1279_v25, 112  ;;  %vm326_vm8 = vcmp.ge.s32.totalorder %v1279_v25, 16  ;;  %p977_p0 = pnand %p976_p8, %p1166_p9 }
  0x44   : > { %v309_v30 = vand.u32 15, %v1282_v26  ;;  %vm322_vm1 = vcmp.ge.s32.totalorder %v302_v29, 1  ;;  %vm324_vm5 = vcmp.le.s32.totalorder %v302_v29, 14  ;;  %vm329_vm9 = vcmp.lt.s32.totalorder %v1282_v26, 240 }
  0x45   : > { %344 = vrot.lane.b32.xlu1 %v1254_v5, %s1066_s28  ;;  %335 = vrot.lane.b32.xlu0 %v1254_v5, %s1065_s27  ;;  %p978_p3 = pneg %p977_p0  ;;  %s1086_s27 = smov [#allocation8]  }
  0x46   : > { %vm323_vm2 = vcmp.ge.s32.totalorder %v309_v30, 1  ;;  %vm325_vm4 = vcmp.le.s32.totalorder %v309_v30, 14 }
  0x49   : > { %364 = vrot.lane.b32.xlu1 %v1248_v4, %s1066_s28  ;;  %362 = vrot.lane.b32.xlu0 %v1240_v2, %s1066_s28  ;;  %s979_s28 = sshll.u32 %s1086_s27, 4  ;;  %s980_s28 = int_to_ptr.vmem [resolvable:$false] %s979_s28 }
  0x4a   : > { %s981_s20 = scalar_lea.vmem %s980_s28, 256  ;;  %p982_p13 = scmp.lt.s32.totalorder %s659_s13, %s980_s28 }
  0x4b   : > { %p983_p5 = scmp.lt.s32.totalorder %s981_s20, %s975_s26 }
  0x4d   : > { %398 = vperm.xlu1 %897, %v294_v6   ;;  %384 = vperm.xlu0 %896, %v294_v6   ;;  %p984_p12 = por %p983_p5, %p982_p13 }
  0x4f   : > { %p985_p6 = pnand %p984_p12, %p978_p3 }
  0x51   : > { %898 = vset.pattern.permute.xlu1 %v1067_v7  ;;  %899 = vset.pattern.permute.xlu0 %v1068_v8 }
  0x52   : > { %412 = vperm.xlu1 %898, %v294_v6   ;;  %466 = vperm.xlu0 %899, %v294_v6  }
  0x56   : > { %900 = vset.pattern.permute.xlu1 %v1069_v9  ;;  %902 = vset.pattern.permute.xlu0 %v1070_v10 }
  0x57   : > { %474 = vperm.xlu1 %900, %v294_v6   ;;  %523 = vperm.xlu0 %902, %v294_v6  }
  0x5b   : > { %901 = vset.pattern.permute.xlu1 %v1071_v11  ;;  %405 = vrot.lane.b32.xlu0 %v1242_v3, %s1072_s12 }
  0x5c   : > { %426 = vperm.xlu1 %901, %v294_v6   ;;  %905 = vset.pattern.permute.xlu0 %v1073_v12 }
  0x5f   : > { %440 = vperm.xlu0 %905, %v294_v6  }
  0x60   : > { %903 = vset.pattern.permute.xlu1 %v1074_v13 }
  0x61   : > { %537 = vperm.xlu1 %903, %v294_v6  }
  0x63   : > { %419 = vrot.lane.b32.xlu0 %v1240_v2, %s1072_s12 }
  0x64   : > { %908 = vset.pattern.permute.xlu0 %v1075_v14 }
  0x65   : > { %904 = vset.pattern.permute.xlu1 %v1076_v15 }
  0x66   : > { %482 = vperm.xlu1 %904, %v294_v6  }
  0x67   : > { %454 = vperm.xlu0 %908, %v294_v6  }
  0x6a   : > { %407 = vrot.lane.b32.xlu1 %v1254_v5, %s1072_s12 }
  0x6b   : > { %909 = vset.pattern.permute.xlu0 %v1077_v16  ;;  %906 = vset.pattern.permute.xlu1 %v1078_v17 }
  0x6c   : > { %565 = vperm.xlu0 %909, %v294_v6  }
  0x6e   : > { %551 = vperm.xlu1 %906, %v294_v6  }
  0x70   : > { %546 = vrot.lane.b32.xlu0 %v1254_v5, %s1079_s16 }
  0x71   : > { %912 = vset.pattern.permute.xlu0 %v1080_v18 }
  0x72   : > { %907 = vset.pattern.permute.xlu1 %v1081_v19 }
  0x73   : > { %490 = vperm.xlu1 %907, %v294_v6  }
  0x74   : > { %506 = vperm.xlu0 %912, %v294_v6  }
  0x77   : > { %421 = vrot.lane.b32.xlu1 %v1248_v4, %s1072_s12 }
  0x78   : > { %910 = vset.pattern.permute.xlu1 %v1082_v20  ;;  %558 = vrot.lane.b32.xlu0 %v1240_v2, %s1079_s16 }
  0x79   : > { %913 = vset.pattern.permute.xlu0 %v1083_v21 }
  0x7b   : > { %498 = vperm.xlu1 %910, %v294_v6  }
  0x7c   : > { %593 = vperm.xlu0 %913, %v294_v6  }
  0x7f   : > { %544 = vrot.lane.b32.xlu1 %v1242_v3, %s1079_s16 }
  0x80   : > { %911 = vset.pattern.permute.xlu1 %v1084_v22 }
  0x83   : > { %579 = vperm.xlu1 %911, %v294_v6  }
  0x87   : > { %560 = vrot.lane.b32.xlu1 %v1248_v4, %s1079_s16 }
  0x88   : > { %914 = vset.pattern.permute.xlu1 %v1085_v23 }
  0x8b   : > { %372 = vperm.xlu1 %914, %v294_v6  }
  0xaf   : > { %v334_v27 = vpop.permute.xlu0 %333  ;;  %v355_v28 = vpop.permute.xlu1 %354 }
  0xb3   : > { %v343_v31 = vpop.permute.xlu0 %342  ;;  %v357_v33 = vpop.permute.xlu1 %356 }
  0xb4   : > { %v358_v38 = vsel %vm337_vm0, %v355_v28, %v357_v33  ;;  %v359_v39 = vsel %vm337_vm0, %v357_v33, %v355_v28 }
  0xb5   : > { %v360_v40 = vsel %vm322_vm1, %v359_v39, 0.0  ;;  %v361_v41 = vsel %vm323_vm2, %v358_v38, 0.0 }
  0xb7   : > { %v336_v32 = vpop.permute.xlu0 %335  ;;  %v345_v42 = vpop.permute.xlu1 %344 }
  0xb8   : > { %v338_v34 = vsel %vm337_vm0, %v334_v27, %v336_v32  ;;  %v339_v35 = vsel %vm337_vm0, %v336_v32, %v334_v27  ;;  %v348_v43 = vsel %vm346_vm3, %v345_v42, %v343_v31  ;;  %v347_v50 = vsel %vm346_vm3, %v343_v31, %v345_v42 }
  0xb9   : > { %v340_v36 = vsel %vm322_vm1, %v339_v35, 0.0  ;;  %v341_v37 = vsel %vm323_vm2, %v338_v34, 0.0  ;;  %v350_v46 = vsel %vm325_vm4, %v348_v43, 0.0  ;;  %v349_v54 = vsel %vm324_vm5, %v347_v50, 0.0 }
  0xba   : > { %376 = vrot.lane.b32.xlu1 %v340_v36, %s1072_s12  ;;  %378 = vrot.lane.b32.xlu0 %v341_v37, %s1072_s12 }
  0xbb   : > { %v363_v44 = vpop.permute.xlu0 %362  ;;  %v365_v45 = vpop.permute.xlu1 %364 }
  0xbc   : > { %v367_v47 = vsel %vm346_vm3, %v365_v45, %v363_v44  ;;  %v366_v52 = vsel %vm346_vm3, %v363_v44, %v365_v45 }
  0xbd   : > { %v369_v51 = vsel %vm325_vm4, %v367_v47, 0.0  ;;  %v368_v56 = vsel %vm324_vm5, %v366_v52, 0.0 }
  0xbe   : > { %391 = vrot.lane.b32.xlu1 %v360_v40, %s1072_s12  ;;  %393 = vrot.lane.b32.xlu0 %v361_v41, %s1072_s12 }
  0xc2   : > { %515 = vrot.lane.b32.xlu1 %v340_v36, %s1079_s16  ;;  %530 = vrot.lane.b32.xlu0 %v360_v40, %s1079_s16 }
  0xc6   : > { %517 = vrot.lane.b32.xlu1 %v341_v37, %s1079_s16  ;;  %435 = vrot.lane.b32.xlu0 %v350_v46, %s1072_s12 }
  0xc8   : > { %v1300_v48 = vpop.permute.xlu0 %384  ;;  %v1302_v49 = vpop.permute.xlu1 %398 }
  0xca   : > { %532 = vrot.lane.b32.xlu1 %v361_v41, %s1079_s16  ;;  %574 = vrot.lane.b32.xlu0 %v350_v46, %s1079_s16 }
  0xcd   : > { %v1310_v53 = vpop.permute.xlu1 %412  ;;  %v467_v55 = vpop.permute.xlu0 %466 }
  0xce   : > { %433 = vrot.lane.b32.xlu1 %v349_v54, %s1072_s12  ;;  %588 = vrot.lane.b32.xlu0 %v369_v51, %s1079_s16  ;;  %v469_v59 = vmul.f32 %v467_v55, %v340_v36  ;;  %v470_v60 = vmul.f32 %v467_v55, %v341_v37 }
  0xd2   : > { %v475_v57 = vpop.permute.xlu1 %474  ;;  %447 = vrot.lane.b32.xlu1 %v368_v56, %s1072_s12  ;;  %v1315_v58 = vpop.permute.xlu0 %523 }
  0xd3   : > { %v477_v61 = vmul.f32 %v475_v57, %v360_v40  ;;  %v478_v62 = vmul.f32 %v475_v57, %v361_v41 }
  0xd5   : > { %v479_v63 = vadd.f32 %v477_v61, %v469_v59  ;;  %v480_v0 = vadd.f32 %v478_v62, %v470_v60 }
  0xd6   : > { %449 = vrot.lane.b32.xlu1 %v369_v51, %s1072_s12  ;;  %v406_v1 = vpop.permute.xlu0 %405 }
  0xd7   : > { %v427_v6 = vpop.permute.xlu1 %426 }
  0xda   : > { %572 = vrot.lane.b32.xlu1 %v349_v54, %s1079_s16  ;;  %v1319_v7 = vpop.permute.xlu0 %440 }
  0xdc   : > { %v1321_v8 = vpop.permute.xlu1 %537 }
  0xde   : > { %586 = vrot.lane.b32.xlu1 %v368_v56, %s1079_s16  ;;  %v420_v9 = vpop.permute.xlu0 %419 }
  0xe1   : > { %v483_v10 = vpop.permute.xlu1 %482 }
  0xe2   : > { %v485_v11 = vmul.f32 %v483_v10, %v1242_v3  ;;  %v486_v12 = vmul.f32 %v483_v10, %v1254_v5  ;;  %v1326_v15 = vpop.permute.xlu0 %454 }
  0xe4   : > { %v487_v13 = vadd.f32 %v485_v11, %v479_v63  ;;  %v488_v14 = vadd.f32 %v486_v12, %v480_v0 }
  0xe5   : > { %v408_v16 = vpop.permute.xlu1 %407 }
  0xe6   : > { %v410_v47 = vsel %vm380_vm6, %v408_v16, %v406_v1 }
  0xe7   : > { %v1330_v18 = vpop.permute.xlu0 %565  ;;  %v415_v60 = vmul.f32 %v1310_v53, %v410_v47 }
  0xe9   : > { %v1328_v17 = vpop.permute.xlu1 %551 }
  0xeb   : > { %v1332_v20 = vpop.permute.xlu0 %546 }
  0xee   : > { %v491_v19 = vpop.permute.xlu1 %490 }
  0xef   : > { %v493_v22 = vmul.f32 %v491_v19, %v1240_v2  ;;  %v494_v23 = vmul.f32 %v491_v19, %v1248_v4  ;;  %v507_v3 = vpop.permute.xlu0 %506 }
  0xf0   : > { %v509_v30 = vmul.f32 %v507_v3, %v368_v56  ;;  %v510_v31 = vmul.f32 %v507_v3, %v369_v51 }
  0xf1   : > { %v495_v5 = vadd.f32 %v493_v22, %v487_v13  ;;  %v496_v27 = vadd.f32 %v494_v23, %v488_v14 }
  0xf2   : > { %v422_v21 = vpop.permute.xlu1 %421 }
  0xf3   : > { %v559_v38 = vpop.permute.xlu0 %558  ;;  %v423_v57 = vsel %vm380_vm6, %v420_v9, %v422_v21  ;;  %v424_v59 = vsel %vm380_vm6, %v422_v21, %v420_v9 }
  0xf4   : > { %v430_v10 = vmul.f32 %v427_v6, %v423_v57 }
  0xf6   : > { %v499_v24 = vpop.permute.xlu1 %498 }
  0xf7   : > { %v501_v28 = vmul.f32 %v499_v24, %v349_v54  ;;  %v502_v29 = vmul.f32 %v499_v24, %v350_v46  ;;  %v1344_v39 = vpop.permute.xlu0 %593  ;;  %v409_v46 = vsel %vm380_vm6, %v406_v1, %v408_v16  ;;  %v429_v1 = vmul.f32 %v427_v6, %v424_v59 }
  0xf8   : > { %v416_v61 = vmul.f32 %v1310_v53, %v409_v46 }
  0xf9   : > { %v503_v32 = vadd.f32 %v501_v28, %v495_v5  ;;  %v504_v33 = vadd.f32 %v502_v29, %v496_v27 }
  0xfa   : > { %v545_v36 = vpop.permute.xlu1 %544 }
  0xfb   : > { %v1336_v34 = vadd.f32 %v509_v30, %v503_v32  ;;  %v1338_v35 = vadd.f32 %v510_v31, %v504_v33  ;;  %v548_v28 = vsel %vm519_vm7, %v545_v36, %v1332_v20  ;;  %v549_v29 = vsel %vm519_vm7, %v1332_v20, %v545_v36 }
  0xfe   : > { %v1340_v37 = vpop.permute.xlu1 %579 }
 0x102   : > { %v561_v2 = vpop.permute.xlu1 %560 }
 0x103   : > { %v563_v20 = vsel %vm519_vm7, %v561_v2, %v559_v38 }
 0x106   : > { %v1342_v4 = vpop.permute.xlu1 %372 }
 0x12c   : > { %v377_v40 = vpop.permute.xlu1 %376  ;;  %v379_v41 = vpop.permute.xlu0 %378 }
 0x12d   : > { %v381_v42 = vsel %vm380_vm6, %v377_v40, %v379_v41  ;;  %v382_v43 = vsel %vm380_vm6, %v379_v41, %v377_v40  ;;  %v554_v40 = vmul.f32 %v1328_v17, %v548_v28 }
 0x12e   : > { %v387_v52 = vmul.f32 %v1300_v48, %v382_v43  ;;  %v388_v54 = vmul.f32 %v1300_v48, %v381_v42 }
 0x130   : > { %v392_v44 = vpop.permute.xlu1 %391  ;;  %v394_v45 = vpop.permute.xlu0 %393 }
 0x131   : > { %v395_v50 = vsel %vm380_vm6, %v392_v44, %v394_v45  ;;  %v396_v51 = vsel %vm380_vm6, %v394_v45, %v392_v44  ;;  %v562_v44 = vsel %vm519_vm7, %v559_v38, %v561_v2 }
 0x132   : > { %v401_v55 = vmul.f32 %v1302_v49, %v396_v51  ;;  %v402_v56 = vmul.f32 %v1302_v49, %v395_v50  ;;  %v568_v38 = vmul.f32 %v1330_v18, %v562_v44 }
 0x134   : > { %v403_v62 = vadd.f32 %v401_v55, %v387_v52  ;;  %v404_v63 = vadd.f32 %v402_v56, %v388_v54  ;;  %v516_v0 = vpop.permute.xlu1 %515  ;;  %v531_v14 = vpop.permute.xlu0 %530  ;;  %v569_v55 = vmul.f32 %v1330_v18, %v563_v20 }
 0x136   : > { %v417_v48 = vadd.f32 %v415_v60, %v403_v62  ;;  %v418_v11 = vadd.f32 %v416_v61, %v404_v63 }
 0x138   : > { %v518_v12 = vpop.permute.xlu1 %517  ;;  %v431_v13 = vadd.f32 %v429_v1, %v417_v48  ;;  %v432_v49 = vadd.f32 %v430_v10, %v418_v11  ;;  %v436_v21 = vpop.permute.xlu0 %435 }
 0x139   : > { %v520_v6 = vsel %vm519_vm7, %v516_v0, %v518_v12  ;;  %v521_v22 = vsel %vm519_vm7, %v518_v12, %v516_v0 }
 0x13a   : > { %v526_v30 = vmul.f32 %v1315_v58, %v520_v6  ;;  %v527_v31 = vmul.f32 %v1315_v58, %v521_v22 }
 0x13c   : > { %v533_v16 = vpop.permute.xlu1 %532  ;;  %v575_v51 = vpop.permute.xlu0 %574 }
 0x13d   : > { %v534_v9 = vsel %vm519_vm7, %v531_v14, %v533_v16  ;;  %v535_v53 = vsel %vm519_vm7, %v533_v16, %v531_v14  ;;  %v607_v16 = vstv %s1407_s3 }
 0x13e   : > { %v540_v24 = vmul.f32 %v1321_v8, %v534_v9  ;;  %v541_v5 = vmul.f32 %v1321_v8, %v535_v53  ;;  %v555_v8 = vmul.f32 %v1328_v17, %v549_v29 }
 0x140   : > { %v434_v19 = vpop.permute.xlu1 %433  ;;  %v542_v41 = vadd.f32 %v540_v24, %v526_v30  ;;  %v543_v42 = vadd.f32 %v541_v5, %v527_v31  ;;  %v589_v63 = vpop.permute.xlu0 %588 }
 0x141   : > { %v437_v23 = vsel %vm380_vm6, %v434_v19, %v436_v21  ;;  %v438_v3 = vsel %vm380_vm6, %v436_v21, %v434_v19 }
 0x142   : > { %v443_v32 = vmul.f32 %v1319_v7, %v438_v3  ;;  %v444_v33 = vmul.f32 %v1319_v7, %v437_v23  ;;  %v556_v47 = vadd.f32 %v554_v40, %v542_v41  ;;  %v557_v50 = vadd.f32 %v555_v8, %v543_v42 }
 0x144   : > { %v448_v27 = vpop.permute.xlu1 %447  ;;  %v445_v7 = vadd.f32 %v443_v32, %v431_v13  ;;  %v446_v45 = vadd.f32 %v444_v33, %v432_v49  ;;  %v570_v18 = vadd.f32 %v568_v38, %v556_v47  ;;  %v571_v1 = vadd.f32 %v569_v55, %v557_v50 }
 0x148   : > { %v450_v43 = vpop.permute.xlu1 %449 }
 0x149   : > { %v451_v58 = vsel %vm380_vm6, %v448_v27, %v450_v43  ;;  %v452_v36 = vsel %vm380_vm6, %v450_v43, %v448_v27 }
 0x14a   : > { %v457_v46 = vmul.f32 %v1326_v15, %v452_v36  ;;  %v458_v17 = vmul.f32 %v1326_v15, %v451_v58 }
 0x14c   : > { %v459_v52 = vadd.f32 %v457_v46, %v445_v7  ;;  %v460_v54 = vadd.f32 %v458_v17, %v446_v45  ;;  %v573_v2 = vpop.permute.xlu1 %572 }
 0x14d   : > { %v576_v56 = vsel %vm519_vm7, %v573_v2, %v575_v51  ;;  %v577_v15 = vsel %vm519_vm7, %v575_v51, %v573_v2 }
 0x14e   : > { %v461_v57 = vsel %vm326_vm8, %v459_v52, 0.0  ;;  %v464_v59 = vadd.f32 %v460_v54, %v1342_v4  ;;  %v582_v60 = vmul.f32 %v1340_v37, %v576_v56  ;;  %v583_v61 = vmul.f32 %v1340_v37, %v577_v15 }
 0x14f   : > { %v463_v62 = vadd.f32 %v461_v57, %v1342_v4 }
 0x150   : > { %v514_v0 = vadd.f32 %v1338_v35, %v464_v59  ;;  %v587_v10 = vpop.permute.xlu1 %586  ;;  %v584_v13 = vadd.f32 %v582_v60, %v570_v18  ;;  %v585_v49 = vadd.f32 %v583_v61, %v571_v1 }
 0x151   : > { %v513_v48 = vadd.f32 %v1336_v34, %v463_v62  ;;  %v590_v11 = vsel %vm519_vm7, %v587_v10, %v589_v63  ;;  %v591_v12 = vsel %vm519_vm7, %v589_v63, %v587_v10 }
 0x152   : > { %v596_v37 = vmul.f32 %v1344_v39, %v590_v11  ;;  %v597_v4 = vmul.f32 %v1344_v39, %v591_v12 }
 0x154   : > { %v598_v35 = vadd.f32 %v596_v37, %v584_v13  ;;  %v599_v14 = vadd.f32 %v597_v4, %v585_v49 }
 0x156   : > { %v601_v19 = vsel %vm329_vm9, %v599_v14, 0.0  ;;  %v602_v9 = vadd.f32 %v598_v35, %v513_v48 }
 0x157   : > { %v603_v34 = vadd.f32 %v601_v19, %v514_v0 }
 0x158   : > { %vm605_vm10 = vcmp.ge.f32.partialorder %v602_v9, 0.0  ;;  %v608_v53 = vmul.f32 %v607_v16, %v602_v9 }
 0x159   : > { %vm606_vm12 = vcmp.ge.f32.partialorder %v603_v34, 0.0  ;;  %v609_v25 = vmul.f32 %v607_v16, %v603_v34 }
 0x15a   : > { %v610_v21 = vsel %vm605_vm10, %v602_v9, %v608_v53 }
 0x15b   : > { %v611_v6 = vsel %vm606_vm12, %v603_v34, %v609_v25  ;;  %v613_v22 = vsel %vm612_vm11, %v610_v21, 0.0  ;;  %v619_v23 = vmul.f32 %v610_v21, %v610_v21 }
 0x15c   : > { %v614_v3 = vsel %vm612_vm11, %v611_v6, 0.0  ;;  %v620_v24 = vmul.f32 %v611_v6, %v611_v6 }
 0x15d   : > { %v615_v39 = vadd.f32 %v614_v3, %v613_v22  ;;  %v621_v5 = vsel %vm612_vm11, %v619_v23, 0.0 }
 0x15e   : > { %v622_v26 = vsel %vm612_vm11, %v620_v24, 0.0 }
 0x15f   : > { %616 = vadd.xlane.f32.xlu1 %v615_v39  ;;  %v623_v27 = vadd.f32 %v622_v26, %v621_v5 }
 0x161   : > { %624 = vadd.xlane.f32.xlu0 %v623_v27 }
 0x1e8   : > { %v617_v28 = vpop.xlane.xlu1 %616 }
 0x1e9   : > { %v618_v29 = vmul.f32 0.00390625, %v617_v28 }
 0x1ea   : > { %v625_v30 = vpop.xlane.xlu0 %624 }
 0x1eb   : > { %v626_v31 = vmul.f32 0.00390625, %v625_v30  ;;  %v627_v32 = vmul.f32 %v618_v29, %v618_v29  ;;  %v630_v41 = vsub.f32 %v610_v21, %v618_v29  ;;  %v631_v42 = vsub.f32 %v611_v6, %v618_v29 }
 0x1ed   : > { %v628_v33 = vsub.f32 %v626_v31, %v627_v32 }
 0x1ef   : > { %v629_v40 = vmax.f32 %v628_v33, 0.0 }
 0x1f1   : > { %v632_v8 = vadd.f32 1e-05, %v629_v40 }
 0x1f3   : > { %917 = vrsqrt.f32 %v632_v8 }
 0x200   : > { %v918_v43 = vpop.eup %917 }
 0x201   : > { %v634_v44 = vmul.f32 %v918_v43, %v630_v41  ;;  %v635_v20 = vmul.f32 %v918_v43, %v631_v42 }
 0x203   : > { %v638_v58 = vcombine.low %v634_v44, %v635_v20 }
 0x205   : > { %640 = vst [vmem:[%s287_s11] sm:$0xff] %v638_v58 }
 0x206   : > { %988 = shalt.err (!%p985_p6)
}
 0x207   : > { %s989_s7 = scalar_lea.hbm %s656_s25, 128  ;;  %s993_s10 = scalar_lea.hbm %s1474_s4, 256 }
 0x208   : > { %p990_p7 = scmp.ne.s32.totalorder %s656_s25, %s989_s7  ;;  %p994_p4 = scmp.lt.s32.totalorder %s656_s25, %s1474_s4 }
 0x209   : > { %p995_p10 = scmp.lt.s32.totalorder %s993_s10, %s989_s7 }
 0x20a   : > { %p991_p1 = pnand %p990_p7, %p1166_p9 }
 0x20b   : > { %p996_p8 = por %p995_p10, %p994_p4 }
 0x20c   : > { %p992_p2 = pneg %p991_p1 }
 0x20e   : > { %p997_p0 = pnand %p996_p8, %p992_p2 }
 0x210   : > { %1000 = shalt.err (!%p997_p0)
}
 0x211   : > { %810 = dma.vmem_to_hbm [thread:$0]  (%p1166_p9), %s659_s13, 128, %s656_s25, %s642_s14  }
 0x212 PF: > { %s670_s3 = sand.u32 1, %s1039_s17   ;;  %p1481_p3 = scmp.ge.s32.totalorder %s1059_s22, 2 }
 0x213   : > { %s671_s23 = scalar_lea.sflag [#allocation5], %s670_s3 }
 0x214   : > { %p820_p13 = pnand %p1481_p3, %p1173_p11 }
 0x216   : > { %p821_p5 = pneg %p820_p13 }
 0x218   : > { %1034 = dma.done.wait (%p821_p5), %s671_s23, 128  }
 0x219   : > { %1036 = vsyncadd (%p821_p5), %s671_s23, 4294967168  ;;  %s24_s22 = sadd.s32 1, %s1059_s22   ;;  %s1482_s17 = smov %s1043_s18 }
 0x21a   : > { %p21_p12 = scmp.ge.s32.totalorder %s24_s22, 4   ;;  %s1483_s18 = smov %s1047_s19 }
 0x21b   : > { %s1484_s19 = smov %s1171_s30  ;;  %s1485_s20 = smov %s1055_s21 }
 0x21c   : > { %s1486_s21 = smov %s1488_s24  ;;  %23 = sbr.rel (!%p21_p12) target bundleno = 10 (0xa), region = 97 }
 0x221   :  { %676 = vsyncpa [#allocation4], 1 }
 0x222   :  { %678 = vsyncpa [#allocation4 + $0x1], 1 }
 0x223   :  { %679 = vsyncpa [#allocation7], 1 }
 0x224   :  { %681 = vsyncpa [#allocation7 + $0x1], 1 }
 0x225   :  { %682 = vsyncpa [#allocation5], 1 }
 0x226   :  { %684 = vsyncpa [#allocation5 + $0x1], 1 }

</bundles_post_ra>
